<compile_context>
chip_gen: v6e
topology: v6e:2x2x1
jax: 0.10.0
libtpu: 0.0.40
codegen_flags: <defaults>
</compile_context>

<pallas_src>
import numpy as np

import jax
import jax.numpy as jnp
from jax.experimental import pallas as pl
from jax.experimental.pallas import tpu as pltpu


def _round_up(x, m):
    return ((x + m - 1) // m) * m


def _vmem_limit_bytes(buffers):
    """buffers: iterable of (shape, dtype, n_copies). Returns a clamped limit."""
    total = 0
    for shape, dtype, n in buffers:
        sz = 1
        for s in shape:
            sz *= int(s)
        total += sz * np.dtype(dtype).itemsize * n
    # 2x headroom, clamped to [32 MiB, 64 MiB] (64 MiB = v7x per-core VMEM).
    return int(min(64 << 20, max(32 << 20, 2 * total)))


# --------------------------------------------------------------------------
# Stage 1: input projection  xw[t] = X[t] @ W_xh + b_h   (parallel over time)
# --------------------------------------------------------------------------
def _proj_kernel(x_ref, wxh_ref, bh_ref, xw_ref):
    """x_ref: (Tc, B, I) bf16/f32, wxh_ref: (I, Hp), bh_ref: (1, Hp) f32,
    xw_ref: (Tc, B, Hp) f32."""
    tc, b, i = x_ref.shape
    x2 = x_ref[...].reshape(tc * b, i)                      # (Tc*B, I)
    y = jnp.dot(x2, wxh_ref[...], preferred_element_type=jnp.float32)
    y = y + bh_ref[...]                                     # (1, Hp) broadcast
    xw_ref[...] = y.reshape(tc, b, y.shape[-1])


# --------------------------------------------------------------------------
# Stage 2: recurrence  h_t = tanh(xw_t + h_{t-1} @ W_hh)   (sequential)
# --------------------------------------------------------------------------
def _recurrent_kernel(xw_ref, whh_ref, h0_ref, out_ref, h_scratch):
    """xw_ref: (Tc, B, Hp) f32, whh_ref: (Hp, Hp), h0_ref: (B, Hp) f32,
    out_ref: (Tc, B, Hp), h_scratch: (B, Hp) f32 persistent carry."""

    @pl.when(pl.program_id(0) == 0)
    def _():
        h_scratch[...] = h0_ref[...].astype(jnp.float32)

    whh = whh_ref[...]            # resident weight (bf16 or f32)
    tc = xw_ref.shape[0]

    def step(t, h):
        # MXU in compute dtype, accumulate + tanh in f32 (good on v5e too).
        pre = xw_ref[t] + jnp.dot(h.astype(whh.dtype), whh,
                                  preferred_element_type=jnp.float32)
        h_new = jnp.tanh(pre)
        out_ref[t] = h_new.astype(out_ref.dtype)
        return h_new

    h_scratch[...] = jax.lax.fori_loop(0, tc, step, h_scratch[...],
                                       unroll=True)


# --------------------------------------------------------------------------
# Wrapper
# --------------------------------------------------------------------------
def rnn_scratch(inputs, W_xh, W_hh, b_h, state=None, *,
                compute_dtype=jnp.bfloat16, time_chunk=8):
    """Pallas implementation of RNNScratch.forward.

    inputs: (T, B, num_inputs)
    W_xh:   (num_inputs, num_hiddens)
    W_hh:   (num_hiddens, num_hiddens)
    b_h:    (num_hiddens,)
    state:  None, a (B, H) array, or a 1-tuple `(state,)` (PyTorch style).

    Returns (outputs, last_state): outputs is (T, B, H) (stacked per-step
    hidden states, equivalent to the PyTorch list); last_state == outputs[-1].
    """
    T, B, I = inputs.shape
    H = W_xh.shape[1]
    assert W_xh.shape == (I, H)
    assert W_hh.shape == (H, H)
    assert b_h.shape == (H,)
    out_dtype = inputs.dtype

    if state is None:
        # matmul(None, W_hh) contributes 0 in the reference -> zero init.
        h0 = jnp.zeros((B, H), dtype=jnp.float32)
    else:
        h0 = state[0] if isinstance(state, (tuple, list)) else state
        h0 = h0.astype(jnp.float32)

    # ---- pad to TPU-friendly shapes (exactness preserved, see header) ----
    Hp = _round_up(H, 128)                 # lane-dense output / full MXU lanes
    Bp = _round_up(B, 8)                   # full sublanes
    Tc = max(1, min(time_chunk, T))        # time-chunk size
    Tp = _round_up(T, Tc)
    n_chunks = Tp // Tc

    x_p = jnp.zeros((Tp, Bp, I), dtype=compute_dtype)
    x_p = x_p.at[:T, :B, :].set(inputs.astype(compute_dtype))
    wxh_p = jnp.zeros((I, Hp), dtype=compute_dtype)
    wxh_p = wxh_p.at[:, :H].set(W_xh.astype(compute_dtype))
    whh_p = jnp.zeros((Hp, Hp), dtype=compute_dtype)
    whh_p = whh_p.at[:H, :H].set(W_hh.astype(compute_dtype))
    bh_p = jnp.zeros((1, Hp), dtype=jnp.float32)
    bh_p = bh_p.at[0, :H].set(b_h.astype(jnp.float32))
    h0_p = jnp.zeros((Bp, Hp), dtype=jnp.float32)
    h0_p = h0_p.at[:B, :H].set(h0)

    # ---- stage 1: hoisted input projection (parallel grid) ----------------
    proj_vmem = _vmem_limit_bytes([
        ((Tc, Bp, I), compute_dtype, 2),       # X chunk (double-buffered)
        ((I, Hp), compute_dtype, 2),           # W_xh
        ((1, Hp), jnp.float32, 2),             # b_h
        ((Tc, Bp, Hp), jnp.float32, 2),        # xw chunk out
    ])
    xw = pl.pallas_call(
        _proj_kernel,
        out_shape=jax.ShapeDtypeStruct((Tp, Bp, Hp), jnp.float32),
        grid_spec=pltpu.PrefetchScalarGridSpec(
            num_scalar_prefetch=0,
            grid=(n_chunks,),
            in_specs=[
                pl.BlockSpec((Tc, Bp, I), lambda c: (c, 0, 0)),   # X chunk
                pl.BlockSpec((I, Hp), lambda c: (0, 0)),          # W_xh resident
                pl.BlockSpec((1, Hp), lambda c: (0, 0)),          # b_h resident
            ],
            out_specs=pl.BlockSpec((Tc, Bp, Hp), lambda c: (c, 0, 0)),
        ),
        compiler_params=pltpu.CompilerParams(
            dimension_semantics=("parallel",),
            vmem_limit_bytes=proj_vmem,
        ),
    )(x_p, wxh_p, bh_p)

    # ---- stage 2: sequential recurrence (arbitrary grid over time chunks) -
    rec_vmem = _vmem_limit_bytes([
        ((Tc, Bp, Hp), jnp.float32, 2),        # xw chunk in
        ((Hp, Hp), compute_dtype, 2),          # W_hh resident
        ((Bp, Hp), jnp.float32, 2),            # h0 resident
        ((Tc, Bp, Hp), out_dtype, 2),          # out chunk
        ((Bp, Hp), jnp.float32, 1),            # h scratch
    ])
    outs_p = pl.pallas_call(
        _recurrent_kernel,
        out_shape=jax.ShapeDtypeStruct((Tp, Bp, Hp), out_dtype),
        grid_spec=pltpu.PrefetchScalarGridSpec(
            num_scalar_prefetch=0,
            grid=(n_chunks,),
            in_specs=[
                pl.BlockSpec((Tc, Bp, Hp), lambda c: (c, 0, 0)),  # xw chunk
                pl.BlockSpec((Hp, Hp), lambda c: (0, 0)),         # W_hh resident
                pl.BlockSpec((Bp, Hp), lambda c: (0, 0)),         # h0 resident
            ],
            out_specs=pl.BlockSpec((Tc, Bp, Hp), lambda c: (c, 0, 0)),
            scratch_shapes=[pltpu.VMEM((Bp, Hp), jnp.float32)],
        ),
        compiler_params=pltpu.CompilerParams(
            # Time axis carries the recurrence -> must run sequentially.
            dimension_semantics=("arbitrary",),
            vmem_limit_bytes=rec_vmem,
        ),
    )(xw, whh_p, h0_p)

    outputs = outs_p[:T, :B, :H]
    return outputs, outputs[-1]


# --------------------------------------------------------------------------
# Pure-JAX reference
# --------------------------------------------------------------------------
def _rnn_reference(inputs, W_xh, W_hh, b_h, h0):
    def step(h, x):
        h_new = jnp.tanh(x @ W_xh + h @ W_hh + b_h)
        return h_new, h_new

    last, outs = jax.lax.scan(step, h0, inputs)
    return outs, last


if __name__ == "__main__":
    key = jax.random.PRNGKey(0)
    k1, k2, k3, k4 = jax.random.split(key, 4)

    # Small shapes consistent with the module: seq=8, batch=8, inputs=32, hidden=32.
    T, B, num_inputs, num_hiddens = 8, 8, 32, 32
    sigma = 0.01

    inputs = jax.random.normal(k1, (T, B, num_inputs), dtype=jnp.float32)
    W_xh = jax.random.normal(k2, (num_inputs, num_hiddens), jnp.float32) * sigma
    W_hh = jax.random.normal(k3, (num_hiddens, num_hiddens), jnp.float32) * sigma
    b_h = jnp.zeros((num_hiddens,), dtype=jnp.float32)

    # 1) state=None path (PyTorch default), f32 compute path.
    outs, last = rnn_scratch(inputs, W_xh, W_hh, b_h, state=None,
                             compute_dtype=jnp.float32)
    outs = jax.block_until_ready(outs)
    last = jax.block_until_ready(last)
    ref_outs, ref_last = _rnn_reference(
        inputs, W_xh, W_hh, b_h, jnp.zeros((B, num_hiddens), jnp.float32))
    assert outs.shape == (T, B, num_hiddens)
    assert last.shape == (B, num_hiddens)
    # MXU default-precision matmul vs XLA reference.
    assert jnp.allclose(outs, ref_outs, atol=1e-2, rtol=1e-2)
    assert jnp.allclose(last, ref_last, atol=1e-2, rtol=1e-2)

    # 2) explicit initial state passed as a 1-tuple, bf16 compute path.
    h0 = jax.random.normal(k4, (B, num_hiddens), dtype=jnp.float32)
    outs2, last2 = rnn_scratch(inputs, W_xh, W_hh, b_h, state=(h0,))
    outs2 = jax.block_until_ready(outs2)
    last2 = jax.block_until_ready(last2)
    ref_outs2, ref_last2 = _rnn_reference(inputs, W_xh, W_hh, b_h, h0)
    # bf16 operands -> looser tolerance (values are ~0.01-0.1 magnitude).
    assert jnp.allclose(outs2, ref_outs2, atol=2e-2, rtol=2e-2)
    assert jnp.allclose(last2, ref_last2, atol=2e-2, rtol=2e-2)

    print("KERNEL_OK")
</pallas_src>

<mosaic_0001>
module attributes {stable_mosaic.version = 11 : i64} {
  func.func @_proj_kernel(%arg0: i32, %arg1: memref<8x8x32xf32, #tpu.memory_space<vmem>>, %arg2: memref<32x128xf32, #tpu.memory_space<vmem>>, %arg3: memref<1x128xf32, #tpu.memory_space<vmem>>, %arg4: memref<8x8x128xf32, #tpu.memory_space<vmem>>) attributes {dimension_semantics = [#tpu.dimension_semantics<parallel>], iteration_bounds = array<i64: 1>, scalar_prefetch = 0 : i64, scratch_operands = 0 : i64, tpu.core_type = #tpu.core_type<tc>, window_params = [{transform_indices = @transform_0, window_bounds = array<i64: 8, 8, 32>}, {pipeline_mode = #tpu.pipeline_mode<synchronous>, transform_indices = @transform_1, window_bounds = array<i64: 32, 128>}, {pipeline_mode = #tpu.pipeline_mode<synchronous>, transform_indices = @transform_2, window_bounds = array<i64: 1, 128>}, {transform_indices = @transform_3, window_bounds = array<i64: 8, 8, 128>}]} {
    %c0 = arith.constant 0 : index
    %c0_0 = arith.constant 0 : index
    %c0_1 = arith.constant 0 : index
    %0 = vector.load %arg1[%c0, %c0_0, %c0_1] : memref<8x8x32xf32, #tpu.memory_space<vmem>>, vector<8x8x32xf32>
    %1 = vector.shape_cast %0 : vector<8x8x32xf32> to vector<64x32xf32>
    %c0_2 = arith.constant 0 : index
    %c0_3 = arith.constant 0 : index
    %2 = vector.load %arg2[%c0_2, %c0_3] : memref<32x128xf32, #tpu.memory_space<vmem>>, vector<32x128xf32>
    %cst = arith.constant dense<0.000000e+00> : vector<64x128xf32>
    %3 = tpu.matmul %1, %2, %cst {dimension_numbers = #tpu.dot_dimension_numbers<[1], [0], [0], [1], [0, 0, 1, 1], [], []>} : vector<64x32xf32>, vector<32x128xf32>, vector<64x128xf32> -> vector<64x128xf32>
    %c0_4 = arith.constant 0 : index
    %c0_5 = arith.constant 0 : index
    %4 = vector.load %arg3[%c0_4, %c0_5] : memref<1x128xf32, #tpu.memory_space<vmem>>, vector<1x128xf32>
    %5 = vector.broadcast %4 : vector<1x128xf32> to vector<64x128xf32>
    %6 = arith.addf %3, %5 : vector<64x128xf32>
    %7 = vector.shape_cast %6 : vector<64x128xf32> to vector<8x8x128xf32>
    %c0_6 = arith.constant 0 : index
    %c0_7 = arith.constant 0 : index
    %c0_8 = arith.constant 0 : index
    %8 = vector.load %arg4[%c0_6, %c0_7, %c0_8] : memref<8x8x128xf32, #tpu.memory_space<vmem>>, vector<8x8x128xf32>
    tpu.vector_store %arg4[%c0_6, %c0_7, %c0_8], %7 {strides = array<i32>} : memref<8x8x128xf32, #tpu.memory_space<vmem>>, vector<8x8x128xf32>,
    return
  }
  func.func @transform_0(%arg0: i32) -> (i32, i32, i32) {
    %c0_i32 = arith.constant 0 : i32
    %c0_i32_0 = arith.constant 0 : i32
    %c0_i32_1 = arith.constant 0 : i32
    return %arg0, %c0_i32, %c0_i32_0 : i32, i32, i32
  }
  func.func @transform_1(%arg0: i32) -> (i32, i32) {
    %c0_i32 = arith.constant 0 : i32
    %c0_i32_0 = arith.constant 0 : i32
    %c0_i32_1 = arith.constant 0 : i32
    return %c0_i32, %c0_i32_0 : i32, i32
  }
  func.func @transform_2(%arg0: i32) -> (i32, i32) {
    %c0_i32 = arith.constant 0 : i32
    %c0_i32_0 = arith.constant 0 : i32
    %c0_i32_1 = arith.constant 0 : i32
    return %c0_i32, %c0_i32_0 : i32, i32
  }
  func.func @transform_3(%arg0: i32) -> (i32, i32, i32) {
    %c0_i32 = arith.constant 0 : i32
    %c0_i32_0 = arith.constant 0 : i32
    %c0_i32_1 = arith.constant 0 : i32
    return %arg0, %c0_i32, %c0_i32_0 : i32, i32, i32
  }
}

</mosaic_0001>

<bundles_post_ra>
// kernel: tpu_custom_call.1
= control target key start
LH: loop header
LB: loop body
LE: loop exit
PB: predicated region body
PF: predicated region fallthrough
CT: control target
= control target key end

     0   :  { %8 = vsyncpa [#allocation3], 0  ;;  %s392_s0 = inlined_call_operand.hbm [shape: f32[8,8,32], index: 0, kind: input, shape index: {}]   ;;  %s393_s1 = inlined_call_operand.hbm [shape: f32[32,128], index: 1, kind: input, shape index: {}]   ;;  %s394_s2 = inlined_call_operand.vmem [shape: f32[1,128], index: 2, kind: input, shape index: {}]   ;;  %s395_s3 = inlined_call_operand.hbm [shape: f32[8,8,128], index: 3, kind: output, shape index: {}]  }
   0x1   :  { %9 = vsyncpa [#allocation6], 0 }
   0x2   :  { %10 = vsyncpa [#allocation4], 0  ;;  %s338_s12 = smov [#allocation2]  }
   0x3   :  { %s16_s13 = sshll.u32 %s338_s12, 4  ;;  %s17_s13 = int_to_ptr.vmem [resolvable:$true] %s16_s13 }
   0x4   :  { %s280_s14 = scalar_lea.vmem %s17_s13, 1024  ;;  %p285_p1 = scmp.lt.s32.totalorder %s17_s13, %s17_s13 }
   0x5   :  { %p281_p0 = scmp.ne.s32.totalorder %s17_s13, %s280_s14  ;;  %p286_p2 = scmp.lt.s32.totalorder %s280_s14, %s280_s14 }
   0x7   :  { %p287_p3 = por %p286_p2, %p285_p1 }
   0x9   :  { %p288_p4 = pnand %p287_p3, %p281_p0 }
   0xb   :  { %291 = shalt.err (!%p288_p4)
}
   0xc   :  { %s339_s15 = smov 128   ;;  %s340_s16 = smov 8  }
   0xd   :  { %22 = dma.hbm_to_vmem [thread:$0]  %s392_s0, 1024, %s17_s13, [#allocation3], %s339_s15, %s339_s15, %s340_s16  }
   0xe   :  { %s341_s19 = smov [#allocation5]  }
   0xf   :  { %s28_s20 = sshll.u32 %s341_s19, 4  ;;  %s29_s20 = int_to_ptr.vmem [resolvable:$true] %s28_s20 }
  0x10   :  { %s300_s21 = scalar_lea.vmem %s29_s20, 512  ;;  %p305_p6 = scmp.lt.s32.totalorder %s29_s20, %s29_s20 }
  0x11   :  { %p301_p5 = scmp.ne.s32.totalorder %s29_s20, %s300_s21  ;;  %p306_p7 = scmp.lt.s32.totalorder %s300_s21, %s300_s21 }
  0x13   :  { %p307_p8 = por %p306_p7, %p305_p6 }
  0x15   :  { %p308_p9 = pnand %p307_p8, %p301_p5 }
  0x17   :  { %311 = shalt.err (!%p308_p9)
}
  0x18   :  { %34 = dma.hbm_to_vmem [thread:$0]  %s393_s1, 512, %s29_s20, [#allocation6], %s339_s15, %s339_s15, %s340_s16  }
  0x19   :  { %332 = dma.done.wait [#allocation3], 1024  }
  0x1a   :  { %333 = vsyncadd [#allocation3], 4294966272 }
  0x1b   :  { %334 = dma.done.wait [#allocation6], 512  }
  0x1c   :  { %335 = vsyncadd [#allocation6], 4294966784  ;;  %v54_v0 = vld [vmem:[#allocation5 + $0x18] sm:$0xff]  ;;  %v53_v1 = vld [vmem:[#allocation5 + $0x10] sm:$0xff]  ;;  %vm62_vm0 = vcmask 261120   ;;  %s342_s24 = smov [#allocation7]  }
  0x1d   :  { %239 = vmatprep.subr.mxu0 %v54_v0  ;;  %259 = vmatprep.subr.mxu1 %v54_v0  ;;  %v52_v2 = vld [vmem:[#allocation5 + $0x8] sm:$0xff]  ;;  %v51_v3 = vld [vmem:[#allocation5] sm:$0xff]  ;;  %v45_v8 = vld [vmem:[#allocation2 + $0x10] sm:$0xff]  ;;  %s205_s25 = sshll.u32 %s342_s24, 4  ;;  %s206_s25 = int_to_ptr.vmem [resolvable:$true] %s205_s25 }
  0x1e   :  { %240 = vmatpush3.msra.mxu0 %v54_v0  ;;  %263 = vmatpush3.msra.mxu1 %v54_v0  ;;  %v43_v4 = vld [vmem:[#allocation2] sm:$0xff]  ;;  %v44_v6 = vld [vmem:[#allocation2 + $0x8] sm:$0xff]  ;;  %v49_v9 = vld [vmem:[#allocation2 + $0x30] sm:$0xff]  ;;  %p317_p11 = scmp.lt.s32.totalorder %s206_s25, %s206_s25 }
  0x1f   :  { %241 = vmatprep.subr.mxu0 %v53_v1  ;;  %260 = vmatprep.subr.mxu1 %v53_v1  ;;  %v47_v5 = vld [vmem:[#allocation2 + $0x20] sm:$0xff]  ;;  %v48_v7 = vld [vmem:[#allocation2 + $0x28] sm:$0xff]  ;;  %v46_v10 = vld [vmem:[#allocation2 + $0x18] sm:$0xff] }
  0x20   :  { %242 = vmatpush3.msra.mxu0 %v53_v1  ;;  %264 = vmatpush3.msra.mxu1 %v53_v1  ;;  %v50_v11 = vld [vmem:[#allocation2 + $0x38] sm:$0xff]  ;;  %v218_v12 = vld [vmem:[%s394_s2] ss:$0 sm:$0xff]  ;;  %s312_s2 = scalar_lea.vmem %s206_s25, 1024 }
  0x21   :  { %243 = vmatprep.subr.mxu0 %v52_v2  ;;  %261 = vmatprep.subr.mxu1 %v52_v2  ;;  %p313_p10 = scmp.ne.s32.totalorder %s206_s25, %s312_s2  ;;  %p318_p12 = scmp.lt.s32.totalorder %s312_s2, %s312_s2 }
  0x22   :  { %244 = vmatpush3.msra.mxu0 %v52_v2  ;;  %265 = vmatpush3.msra.mxu1 %v52_v2 }
  0x23   :  { %245 = vmatprep.subr.mxu0 %v51_v3  ;;  %262 = vmatprep.subr.mxu1 %v51_v3  ;;  %p319_p13 = por %p318_p12, %p317_p11 }
  0x24   :  { %246 = vmatpush3.msra.mxu0 %v51_v3  ;;  %266 = vmatpush3.msra.mxu1 %v51_v3 }
  0x25   :  { %247 = vmatprep.mubr.msk.f32.mxu0 %vm62_vm0, %v43_v4  ;;  %253 = vmatprep.mubr.msk.f32.mxu1 %vm62_vm0, %v47_v5  ;;  %p320_p0 = pnand %p319_p13, %p313_p10 }
  0x26   :  { %248 = vmatmul.mubr.msk.f32.vlgmr.msra.gmra.mxu0 %vm62_vm0, %v44_v6  ;;  %254 = vmatmul.mubr.msk.f32.vlgmr.msra.gmra.mxu1 %vm62_vm0, %v48_v7 }
  0x27   :  { %250 = vmatprep.mubr.msk.f32.mxu0 %vm62_vm0, %v45_v8  ;;  %256 = vmatprep.mubr.msk.f32.mxu1 %vm62_vm0, %v49_v9 }
  0x2a   :  { %251 = vmatmul.mubr.msk.f32.gmra.mxu0 %vm62_vm0, %v46_v10  ;;  %257 = vmatmul.mubr.msk.f32.gmra.mxu1 %vm62_vm0, %v50_v11 }
  0xe6   :  { %v249_v13 = vpop.f32.mrf.mxu0  ;;  %v255_v14 = vpop.f32.mrf.mxu1 }
  0xe7   :  { %v159_v15 = vadd.f32 %v249_v13, %v218_v12  ;;  %v179_v16 = vadd.f32 %v255_v14, %v218_v12 }
  0xe8   :  { %v153_v17 = vpop.f32.mrf.mxu0  ;;  %v173_v18 = vpop.f32.mrf.mxu1 }
  0xe9   :  { %193 = vst [vmem:[#allocation7 + $0x8] sm:$0xff] %v159_v15  ;;  %197 = vst [vmem:[#allocation7 + $0x28] sm:$0xff] %v179_v16  ;;  %v154_v19 = vadd.f32 %v218_v12, %v153_v17  ;;  %v174_v20 = vadd.f32 %v218_v12, %v173_v18 }
  0xea   :  { %v252_v21 = vpop.f32.mrf.mxu0  ;;  %v258_v22 = vpop.f32.mrf.mxu1 }
  0xeb   :  { %192 = vst [vmem:[#allocation7] sm:$0xff] %v154_v19  ;;  %196 = vst [vmem:[#allocation7 + $0x20] sm:$0xff] %v174_v20  ;;  %v169_v23 = vadd.f32 %v252_v21, %v218_v12  ;;  %v189_v24 = vadd.f32 %v258_v22, %v218_v12 }
  0xec   :  { %v163_v25 = vpop.f32.mrf.mxu0  ;;  %v183_v26 = vpop.f32.mrf.mxu1 }
  0xed   :  { %195 = vst [vmem:[#allocation7 + $0x18] sm:$0xff] %v169_v23  ;;  %199 = vst [vmem:[#allocation7 + $0x38] sm:$0xff] %v189_v24  ;;  %v164_v27 = vadd.f32 %v218_v12, %v163_v25  ;;  %v184_v28 = vadd.f32 %v218_v12, %v183_v26 }
  0xef   :  { %194 = vst [vmem:[#allocation7 + $0x10] sm:$0xff] %v164_v27  ;;  %198 = vst [vmem:[#allocation7 + $0x30] sm:$0xff] %v184_v28 }
  0xf0   :  { %323 = shalt.err (!%p320_p0)
}
  0xf1   :  { %211 = dma.vmem_to_hbm [thread:$0]  %s206_s25, 1024, %s395_s3, [#allocation4], %s339_s15, %s339_s15, %s340_s16  }
  0xf2   :  { %336 = dma.done.wait [#allocation4], 1024  }
  0xf3   :  { %337 = vsyncadd [#allocation4], 4294966272 }
  0xf4   :  { %215 = vsyncpa [#allocation3], 1 }
  0xf5   :  { %216 = vsyncpa [#allocation6], 1 }
  0xf6   :  { %217 = vsyncpa [#allocation4], 1 }

</bundles_post_ra>
